<compile_context>
chip_gen: v7x
topology: tpu7x:2x2x1
jax: 0.10.0
libtpu: 0.0.40
codegen_flags: <defaults>
</compile_context>

<pallas_src>
import functools
import math

import numpy as np
import jax
import jax.numpy as jnp
from jax.experimental import pallas as pl
from jax.experimental.pallas import tpu as pltpu


def _round_up(a, b):
    return (a + b - 1) // b * b


# ----------------------------------------------------------------------------
# Pass 1: fused  (x @ melW)  ->  power_to_db (without the top_db clamp)
# ----------------------------------------------------------------------------
def _logmel_db_kernel(x_ref, w_ref, o_ref, acc_ref, *, is_log, amin, db_offset):
    # x_ref : (1, tt, tk)  VMEM   input spectrogram tile
    # w_ref : (tk, n_mels) VMEM   mel filterbank tile (K slab)
    # o_ref : (1, tt, n_mels) VMEM  output tile (lane-dense, revisited across k)
    # acc_ref: (tt, n_mels) f32 VMEM scratch accumulator
    k = pl.program_id(2)

    @pl.when(k == 0)
    def _init():
        acc_ref[...] = jnp.zeros_like(acc_ref)

    acc_ref[...] += jnp.dot(
        x_ref[0], w_ref[...], preferred_element_type=jnp.float32
    )

    @pl.when(k == pl.num_programs(2) - 1)
    def _finalize():
        mel = acc_ref[...]
        if is_log:
            # 10*log10(clamp(mel, amin)) - 10*log10(max(amin, ref))
            mel = (10.0 / math.log(10.0)) * jnp.log(jnp.maximum(mel, amin)) - db_offset
        o_ref[0] = mel.astype(o_ref.dtype)


# ----------------------------------------------------------------------------
# Pass 2: log_spec = max(log_spec, global_max - top_db)
# ----------------------------------------------------------------------------
def _clamp_min_kernel(x_ref, thr_ref, o_ref):
    # x_ref : (1, tt, n_mels) VMEM ; thr_ref : (1,) f32 SMEM scalar
    o_ref[...] = jnp.maximum(x_ref[...], thr_ref[0])


def logmel_filterbank(x, melW, *, is_log=True, ref=1.0, amin=1e-10, top_db=80.0,
                      time_tile=128, k_tile=512):
    """x: (batch, time_steps, n_freq) f32; melW: (n_freq, n_mels) f32.

    Returns (batch, time_steps, n_mels), matching LogmelFilterBank.forward.
    """
    if top_db is not None and top_db < 0:
        raise ValueError("top_db must be non-negative")

    B, T, F = x.shape
    Fw, M = melW.shape
    assert Fw == F, "melW first dim must match input freq dim"

    # Tile sizes: time tile sublane-aligned (mult of 8), K tile lane-aligned
    # (mult of 128). Pad with zeros (zeros contribute nothing to the matmul;
    # padded time rows are excluded from the global max and sliced off).
    tt = time_tile if T >= time_tile else _round_up(T, 8)
    tk = k_tile if F >= k_tile else _round_up(F, 128)
    Tp = _round_up(T, tt)
    Fp = _round_up(F, tk)

    xp = jnp.pad(x, ((0, 0), (0, Tp - T), (0, Fp - F)))
    wp = jnp.pad(melW, ((0, Fp - F), (0, 0)))

    n_t = Tp // tt
    n_k = Fp // tk

    db_offset = 10.0 * math.log10(max(amin, ref)) if is_log else 0.0
    kernel = functools.partial(
        _logmel_db_kernel, is_log=bool(is_log), amin=float(amin),
        db_offset=float(db_offset))

    logmel_p = pl.pallas_call(
        kernel,
        out_shape=jax.ShapeDtypeStruct((B, Tp, M), x.dtype),
        grid=(B, n_t, n_k),
        in_specs=[
            pl.BlockSpec((1, tt, tk), lambda b, t, k: (b, t, k)),
            pl.BlockSpec((tk, M), lambda b, t, k: (k, 0)),
        ],
        out_specs=pl.BlockSpec((1, tt, M), lambda b, t, k: (b, t, 0)),
        scratch_shapes=[pltpu.VMEM((tt, M), jnp.float32)],
        compiler_params=pltpu.CompilerParams(
            dimension_semantics=("parallel", "parallel", "arbitrary")),
    )(xp, wp)

    if not (is_log and top_db is not None):
        return logmel_p[:, :T, :]

    # Global max over the valid (unpadded) region -- tiny reduction over the
    # already-small logmel output; the clamp itself is a second Pallas pass.
    gmax = jnp.max(logmel_p[:, :T, :])
    thr = jnp.reshape(gmax - top_db, (1,)).astype(logmel_p.dtype)

    clamped = pl.pallas_call(
        _clamp_min_kernel,
        out_shape=jax.ShapeDtypeStruct((B, Tp, M), logmel_p.dtype),
        grid=(B, n_t),
        in_specs=[
            pl.BlockSpec((1, tt, M), lambda b, t: (b, t, 0)),
            pl.BlockSpec(memory_space=pltpu.MemorySpace.SMEM),  # scalar threshold
        ],
        out_specs=pl.BlockSpec((1, tt, M), lambda b, t: (b, t, 0)),
        compiler_params=pltpu.CompilerParams(
            dimension_semantics=("parallel", "parallel")),
    )(logmel_p, thr)

    return clamped[:, :T, :]


# ----------------------------------------------------------------------------
# Deterministic mel filterbank (librosa.filters.mel-style triangular filters)
# ----------------------------------------------------------------------------
def _mel_filterbank(sr, n_fft, n_mels, fmin, fmax):
    def hz_to_mel(f):
        return 2595.0 * np.log10(1.0 + np.asarray(f, dtype=np.float64) / 700.0)

    def mel_to_hz(m):
        return 700.0 * (10.0 ** (np.asarray(m, dtype=np.float64) / 2595.0) - 1.0)

    n_freq = n_fft // 2 + 1
    fft_freqs = np.linspace(0.0, sr / 2.0, n_freq)
    mel_pts = mel_to_hz(np.linspace(hz_to_mel(fmin), hz_to_mel(fmax), n_mels + 2))
    fb = np.zeros((n_mels, n_freq), dtype=np.float64)
    for m in range(n_mels):
        lo, ctr, hi = mel_pts[m], mel_pts[m + 1], mel_pts[m + 2]
        up = (fft_freqs - lo) / max(ctr - lo, 1e-9)
        down = (hi - fft_freqs) / max(hi - ctr, 1e-9)
        fb[m] = np.maximum(0.0, np.minimum(up, down))
    enorm = 2.0 / (mel_pts[2:n_mels + 2] - mel_pts[:n_mels])  # slaney norm
    fb *= enorm[:, None]
    return fb.T.astype(np.float32)  # (n_freq, n_mels)


if __name__ == "__main__":
    # Small shapes consistent with the module (n_fft=1024 -> 513 freq bins).
    sr, n_fft, n_mels = 16000, 1024, 64
    fmin, fmax = 50.0, 7000.0
    ref_p, amin, top_db = 1.0, 1e-10, 80.0

    n_freq = n_fft // 2 + 1          # 513 (exercises K padding to 1024 -> 2 K tiles)
    batch, time_steps = 2, 136       # exercises time tiling + time padding

    key = jax.random.PRNGKey(0)
    # power-spectrogram-like non-negative input: (batch, time_steps, freq_bins)
    x = jax.random.uniform(key, (batch, time_steps, n_freq), dtype=jnp.float32,
                           minval=0.0, maxval=4.0)
    melW = jnp.asarray(_mel_filterbank(sr, n_fft, n_mels, fmin, fmax))  # (513, 64)

    out = logmel_filterbank(x, melW, is_log=True, ref=ref_p, amin=amin,
                            top_db=top_db)
    out = jax.block_until_ready(out)

    # Pure-JAX reference of the PyTorch forward (f32, HIGHEST precision matmul).
    mel_ref = jnp.matmul(x, melW, precision=jax.lax.Precision.HIGHEST)
    log_ref = (10.0 * jnp.log10(jnp.maximum(mel_ref, amin))
               - 10.0 * np.log10(max(amin, ref_p)))
    log_ref = jnp.maximum(log_ref, jnp.max(log_ref) - top_db)

    assert out.shape == (batch, time_steps, n_mels)
    max_err = float(jnp.max(jnp.abs(out - log_ref)))
    # dB-domain comparison; tolerance covers MXU f32 multi-pass vs XLA HIGHEST.
    assert jnp.allclose(out, log_ref, atol=5e-2, rtol=1e-3), max_err

    print("KERNEL_OK")
</pallas_src>

<mosaic_0001>
module attributes {stable_mosaic.version = 11 : i64} {
  func.func @_logmel_db_kernel(%arg0: i32, %arg1: i32, %arg2: i32, %arg3: memref<1x128x512xf32, #tpu.memory_space<vmem>>, %arg4: memref<512x64xf32, #tpu.memory_space<vmem>>, %arg5: memref<1x128x64xf32, #tpu.memory_space<vmem>>, %arg6: memref<128x64xf32, #tpu.memory_space<vmem>>) attributes {dimension_semantics = [#tpu.dimension_semantics<parallel>, #tpu.dimension_semantics<parallel>, #tpu.dimension_semantics<arbitrary>], iteration_bounds = array<i64: 2, 2, 2>, scalar_prefetch = 0 : i64, scratch_operands = 1 : i64, tpu.core_type = #tpu.core_type<tc>, window_params = [{transform_indices = @transform_0, window_bounds = array<i64: 1, 128, 512>}, {transform_indices = @transform_1, window_bounds = array<i64: 512, 64>}, {transform_indices = @transform_2, window_bounds = array<i64: 1, 128, 64>}]} {
    %c0_i32 = arith.constant 0 : i32
    %0 = arith.cmpi eq, %arg2, %c0_i32 : i32
    %1 = arith.extui %0 : i1 to i32
    %c0_i32_0 = arith.constant 0 : i32
    %2 = arith.cmpi ne, %1, %c0_i32_0 : i32
    scf.if %2 {
      %cst_10 = arith.constant 0.000000e+00 : f32
      %13 = vector.broadcast %cst_10 : f32 to vector<128x64xf32>
      %c0_11 = arith.constant 0 : index
      %c0_12 = arith.constant 0 : index
      %14 = vector.load %arg6[%c0_11, %c0_12] : memref<128x64xf32, #tpu.memory_space<vmem>>, vector<128x64xf32>
      tpu.vector_store %arg6[%c0_11, %c0_12], %13 {strides = array<i32>} : memref<128x64xf32, #tpu.memory_space<vmem>>, vector<128x64xf32>,
    } else {
    }
    %c0 = arith.constant 0 : index
    %c0_1 = arith.constant 0 : index
    %3 = vector.load %arg6[%c0, %c0_1] : memref<128x64xf32, #tpu.memory_space<vmem>>, vector<128x64xf32>
    %c0_2 = arith.constant 0 : index
    %c0_3 = arith.constant 0 : index
    %c0_4 = arith.constant 0 : index
    %4 = vector.load %arg3[%c0_2, %c0_3, %c0_4] : memref<1x128x512xf32, #tpu.memory_space<vmem>>, vector<1x128x512xf32>
    %5 = vector.shape_cast %4 : vector<1x128x512xf32> to vector<128x512xf32>
    %c0_5 = arith.constant 0 : index
    %c0_6 = arith.constant 0 : index
    %6 = vector.load %arg4[%c0_5, %c0_6] : memref<512x64xf32, #tpu.memory_space<vmem>>, vector<512x64xf32>
    %cst = arith.constant dense<0.000000e+00> : vector<128x64xf32>
    %7 = tpu.matmul %5, %6, %cst {dimension_numbers = #tpu.dot_dimension_numbers<[1], [0], [0], [1], [0, 0, 1, 1], [], []>} : vector<128x512xf32>, vector<512x64xf32>, vector<128x64xf32> -> vector<128x64xf32>
    %8 = arith.addf %3, %7 : vector<128x64xf32>
    %c0_7 = arith.constant 0 : index
    %c0_8 = arith.constant 0 : index
    %9 = vector.load %arg6[%c0_7, %c0_8] : memref<128x64xf32, #tpu.memory_space<vmem>>, vector<128x64xf32>
    tpu.vector_store %arg6[%c0_7, %c0_8], %8 {strides = array<i32>} : memref<128x64xf32, #tpu.memory_space<vmem>>, vector<128x64xf32>,
    %c1_i32 = arith.constant 1 : i32
    %10 = arith.cmpi eq, %arg2, %c1_i32 : i32
    %11 = arith.extui %10 : i1 to i32
    %c0_i32_9 = arith.constant 0 : i32
    %12 = arith.cmpi ne, %11, %c0_i32_9 : i32
    scf.if %12 {
      %c0_10 = arith.constant 0 : index
      %c0_11 = arith.constant 0 : index
      %13 = vector.load %arg6[%c0_10, %c0_11] : memref<128x64xf32, #tpu.memory_space<vmem>>, vector<128x64xf32>
      %cst_12 = arith.constant 1.000000e-10 : f32
      %14 = vector.broadcast %cst_12 : f32 to vector<128x64xf32>
      %15 = arith.maximumf %13, %14 : vector<128x64xf32>
      %16 = math.log %15 : vector<128x64xf32>
      %cst_13 = arith.constant 4.34294462 : f32
      %17 = vector.broadcast %cst_13 : f32 to vector<128x64xf32>
      %18 = arith.mulf %17, %16 : vector<128x64xf32>
      %cst_14 = arith.constant 0.000000e+00 : f32
      %19 = vector.broadcast %cst_14 : f32 to vector<128x64xf32>
      %20 = arith.subf %18, %19 : vector<128x64xf32>
      %c0_15 = arith.constant 0 : index
      %c0_16 = arith.constant 0 : index
      %c0_17 = arith.constant 0 : index
      %21 = vector.load %arg5[%c0_15, %c0_16, %c0_17] : memref<1x128x64xf32, #tpu.memory_space<vmem>>, vector<1x128x64xf32>
      %22 = vector.shape_cast %21 : vector<1x128x64xf32> to vector<128x64xf32>
      %23 = vector.shape_cast %20 : vector<128x64xf32> to vector<1x128x64xf32>
      tpu.vector_store %arg5[%c0_15, %c0_16, %c0_17], %23 {strides = array<i32>} : memref<1x128x64xf32, #tpu.memory_space<vmem>>, vector<1x128x64xf32>,
    } else {
    }
    return
  }
  func.func @transform_0(%arg0: i32, %arg1: i32, %arg2: i32) -> (i32, i32, i32) {
    %c0_i32 = arith.constant 0 : i32
    return %arg0, %arg1, %arg2 : i32, i32, i32
  }
  func.func @transform_1(%arg0: i32, %arg1: i32, %arg2: i32) -> (i32, i32) {
    %c0_i32 = arith.constant 0 : i32
    %c0_i32_0 = arith.constant 0 : i32
    return %arg2, %c0_i32 : i32, i32
  }
  func.func @transform_2(%arg0: i32, %arg1: i32, %arg2: i32) -> (i32, i32, i32) {
    %c0_i32 = arith.constant 0 : i32
    %c0_i32_0 = arith.constant 0 : i32
    return %arg0, %arg1, %c0_i32 : i32, i32, i32
  }
}

</mosaic_0001>

<bundles_post_ra>
// kernel: tpu_custom_call.1
= control target key start
LH: loop header
LB: loop body
LE: loop exit
PB: predicated region body
PF: predicated region fallthrough
CT: control target
= control target key end

     0   :  { %s1813_s0 = inlined_call_operand.hbm [shape: f32[2,256,1024], index: 0, kind: input, shape index: {}]   ;;  %s1814_s1 = inlined_call_operand.vmem [shape: f32[1024,64], index: 1, kind: input, shape index: {}]   ;;  %s1815_s2 = inlined_call_operand.vmem [shape: f32[2,256,64], index: 2, kind: output, shape index: {}]  }
   0x1   :  { %1820 = sst [smem:[#allocation10_spill]] %s1814_s1 }
   0x2   :  { %1821 = sst [smem:[#allocation11_spill]] %s1815_s2 }
   0x3   :  { %7 = vsyncpa [#allocation4], 0 }
   0x4   :  { %9 = vsyncpa [#allocation4 + $0x1], 0  ;;  %s1436_s9 = smov 0   ;;  %s1438_s10 = smov 0  }
   0x5   :  { %s1440_s11 = smov 0   ;;  %s1442_s12 = smov 0  }
   0x6   :  { %s1444_s13 = smov 0   ;;  %s1446_s14 = smov 0  }
   0x7   :  { %s1448_s15 = smov 0   ;;  %s1450_s16 = smov 0  }
   0x8   :  { %s1452_s17 = smov 0   ;;  %s1454_s18 = smov 0  }
   0x9 LB: > { %1822 = sst [smem:[#allocation6_spill]] %s1398_s14  ;;  %s933_s19 = sadd.s32 4294967295, %s1414_s18   ;;  %s1414_s18 = sphi %s1454_s18, %s15_s18   ;;  %s1410_s17 = sphi %s1452_s17, %s1843_s17   ;;  %s1406_s16 = sphi %s1450_s16, %s1842_s16   ;;  %s1402_s15 = sphi %s1448_s15, %s1834_s15   ;;  %s1398_s14 = sphi %s1446_s14, %s1841_s14   ;;  %s1394_s13 = sphi %s1444_s13, %s1840_s13   ;;  %s1390_s12 = sphi %s1442_s12, %s1839_s12   ;;  %s1386_s11 = sphi %s1440_s11, %s1838_s11   ;;  %s1382_s10 = sphi %s1438_s10, %s1837_s10   ;;  %s1378_s9 = sphi %s1436_s9, %s1836_s9  }
   0xa   : > { %1823 = sst [smem:[#allocation7_spill]] %s1402_s15  ;;  %s27_s20 = sadd.s32 1, %s1402_s15 }
   0xb   : > { %p28_p0 = scmp.ge.s32.totalorder %s27_s20, 2  ;;  %s30_s21 = sadd.s32 1, %s1406_s16 }
   0xc   : > { %s34_s22 = sadd.s32 1, %s1410_s17  ;;  %s45_s23 = sadd.s32 1, %s1386_s11 }
   0xd   : > { %s1845_s20 = smov (%p28_p0, %s27_s20), 0  ;;  %s1847_s21 = smov (!%p28_p0, %s30_s21), %s1406_s16 }
   0xe   : > { %1824 = sst [smem:[#allocation8_spill]] %s1845_s20  ;;  %s41_s24 = ssub.s32 %s1402_s15, %s1845_s20 }
   0xf   : > { %p52_p1 = scmp.ne.s32.totalorder %s1386_s11, %s1382_s10  ;;  %p32_p2 = scmp.ge.s32.totalorder %s1847_s21, 2 }
  0x10   : > { %p53_p3 = scmp.eq.s32.totalorder %s1414_s18, 0  ;;  %p58_p4 = scmp.ne.s32.totalorder %s1382_s10, %s1378_s9 }
  0x11   : > { %p59_p5 = scmp.eq.s32.totalorder %s933_s19, 0  ;;  %s1849_s21 = smov (%p32_p2, %s1847_s21), 0 }
  0x12   : > { %1825 = sst [smem:[#allocation9_spill]] %s1849_s21  ;;  %s1851_s22 = smov (!%p32_p2, %s34_s22), %s1410_s17 }
  0x13   : > { %s39_s25 = ssub.s32 %s1406_s16, %s1849_s21  ;;  %p1503_p6 = por %p53_p3, %p52_p1 }
  0x14   : > { %p36_p7 = scmp.ge.s32.totalorder %s1851_s22, 2  ;;  %p1507_p8 = por %p59_p5, %p58_p4 }
  0x15   : > { %p1185_p9 = scmp.lt.s32.totalorder %s1414_s18, 8  ;;  %s136_s28 = sand.u32 1, %s1386_s11  }
  0x16   : > { %s1853_s22 = smov (%p36_p7, %s1851_s22), 0  ;;  %s939_s29 = sshll.u32 %s1402_s15, 2 }
  0x17   : > { %s38_s30 = ssub.s32 %s1410_s17, %s1853_s22  ;;  %s937_s4 = sshll.u32 %s136_s28, 9 }
  0x18   : > { %s40_s3 = sor.u32 %s39_s25, %s38_s30  ;;  %s954_s6 = sshll.u32 %s1406_s16, 7 }
  0x19   : > { %s42_s5 = sor.u32 %s41_s24, %s40_s3  ;;  %s147_s7 = sadd.s32 %s954_s6, %s939_s29 }
  0x1a   : > { %p43_p10 = scmp.eq.s32.totalorder %s42_s5, 0  ;;  %s941_s8 = sshll.u32 %s1410_s17, 8 }
  0x1b   : > { %s149_s19 = sadd.s32 %s941_s8, %s147_s7  ;;  %s140_s21 = scalar_lea.vmem [#allocation3], %s937_s4 }
  0x1c   : > { %s1521_s9 = scalar_select %p43_p10, %s1386_s11, %s45_s23  }
  0x1d   : > { %s152_s20 = sshll.u32 %s140_s21, 4  ;;  %s942_s2 = sshll.u32 %s149_s19, 7  ;;  %s1523_s20 = int_to_ptr.vmem [resolvable:$true] %s152_s20 }
  0x1e   : > { %s1528_s14 = scalar_lea.hbm %s1813_s0, %s942_s2  ;;  %p1534_p11 = pnand %p1185_p9, %p1503_p6 }
  0x1f   : > { %s1538_s21 = scalar_lea.sflag [#allocation4], %s136_s28  ;;  %s1302_s24 = scalar_lea.hbm %s1528_s14, 8192 }
  0x20   : > { %p1303_p12 = scmp.ne.s32.totalorder %s1528_s14, %s1302_s24  ;;  %p1304_p13 = pneg %p1534_p11 }
  0x21   : > { %s1307_s15 = scalar_lea.hbm %s1813_s0, 65536  ;;  %p1308_p2 = scmp.lt.u32.totalorder %s1528_s14, %s1813_s0 }
  0x22   : > { %p1305_p0 = pnand %p1304_p13, %p1303_p12  ;;  %p1309_p3 = scmp.lt.u32.totalorder %s1307_s15, %s1302_s24 }
  0x23   : > { %p1311_p5 = scmp.lt.u32.totalorder %s1302_s24, %s1528_s14 }
  0x24   : > { %p1306_p1 = pneg %p1305_p0  ;;  %p1310_p4 = por %p1309_p3, %p1308_p2 }
  0x26   : > { %p1312_p6 = por %p1311_p5, %p1310_p4 }
  0x28   : > { %p1313_p7 = pnand %p1312_p6, %p1306_p1 }
  0x2a   : > { %1316 = shalt.err (!%p1313_p7)
}
  0x2b   : > { %s1317_s28 = scalar_lea.vmem %s1523_s20, 8192  ;;  %s1416_s29 = smov [#allocation3]  }
  0x2c   : > { %p1318_p9 = scmp.ne.s32.totalorder %s1523_s20, %s1317_s28  ;;  %s1322_s30 = sshll.u32 %s1416_s29, 4  ;;  %s1323_s30 = int_to_ptr.vmem [resolvable:$false] %s1322_s30 }
  0x2d   : > { %s1324_s3 = scalar_lea.vmem %s1323_s30, 16384  ;;  %p1325_p0 = scmp.lt.s32.totalorder %s1523_s20, %s1323_s30 }
  0x2e   : > { %p1320_p10 = pnand %p1318_p9, %p1304_p13  ;;  %p1326_p2 = scmp.lt.s32.totalorder %s1324_s3, %s1317_s28 }
  0x30   : > { %p1321_p12 = pneg %p1320_p10  ;;  %p1327_p3 = por %p1326_p2, %p1325_p0 }
  0x32   : > { %p1328_p4 = pnand %p1327_p3, %p1321_p12 }
  0x34   : > { %1331 = shalt.err (!%p1328_p4)
}
  0x35   : > { %s1417_s4 = smov 1024   ;;  %s1418_s5 = smov 512  }
  0x36   : > { %s1419_s6 = smov 32   ;;  %p943_p13 = scmp.ge.s32.totalorder %s1414_s18, 1 }
  0x37   : > { %1184 = dma.hbm_to_vmem [thread:$0]  (!%p1534_p11), %s1528_s14, 8192, %s1523_s20, %s1538_s21, %s1417_s4, %s1418_s5, %s1419_s6  }
  0x38   : > { %p169_p1 = scmp.lt.s32.totalorder %s1414_s18, 9 }
  0x3a   : > { %p170_p5 = pnand %p943_p13, %p169_p1 }
  0x3b   : > { %s175_s7 = sand.u32 (!%p170_p5), 1, %s1382_s10  }
  0x3c   : > { %173 = sbr.rel (%p170_p5) target bundleno = 425 (0x1a9), region = 28  ;;  %s944_s8 = sshll.u32 (!%p170_p5), %s175_s7, 9 }
  0x3d   : > { %s176_s19 = scalar_lea.sflag (!%p170_p5), [#allocation4], %s175_s7  ;;  %s1569_s24 = scalar_lea.vmem (!%p170_p5), [#allocation3], %s944_s8 }
  0x43   : > { %1373 = dma.done.wait (%p1507_p8), %s176_s19, 8192  }
  0x44   : > { %1375 = vsyncadd (%p1507_p8), %s176_s19, 4294959104  ;;  %s1829_s23 = sld [smem:[#allocation6_spill]]  ;;  %s945_s14 = sshll.u32 %s1390_s12, 6 }
  0x45   : > { %s947_s20 = sshll.u32 %s1394_s13, 4  ;;  %p212_p11 = scmp.lt.s32.totalorder %s945_s14, 127 }
  0x46   : > { %p220_p7 = scmp.lt.s32.totalorder %s947_s20, 31  ;;  %s1830_s15 = sld [smem:[#allocation10_spill]] }
  0x47   : > { %s1855_s14 = smov (!%p212_p11, %s945_s14), 127  ;;  %s1831_s3 = sld [smem:[#allocation11_spill]] }
  0x48   : > { %s946_s21 = sshll.u32 %s1855_s14, 3  ;;  %s1859_s20 = smov (!%p220_p7, %s947_s20), 31 }
  0x49   : > { %p950_p8 = scmp.ne.s32.totalorder %s1390_s12, 0 }
  0x4a   : > { %p218_p6 = scmp.lt.s32.totalorder %s1829_s23, 1  ;;  %vm231_vm0 = vcmask (!%p950_p8), 523264   ;;  %v1420_v0 = vmov (!%p950_p8), 0.0  }
  0x4b   : > { %230 = sbr.rel (%p950_p8) target bundleno = 83 (0x53), region = 36  ;;  %232 = vst.msk [vmem:[#allocation2] sm:$0xff] (!%p950_p8), %vm231_vm0, %v1420_v0  ;;  %233 = vst.msk [vmem:[#allocation2 + $0x8] sm:$0xff] (!%p950_p8), %vm231_vm0, %v1420_v0 }
  0x4c   : > { %s1857_s23 = smov (!%p218_p6, %s1829_s23), 1  ;;  %s1582_s25 = scalar_lea.vmem %s1830_s15, %s946_s21  ;;  %234 = vst.msk [vmem:[#allocation2 + $0x10] sm:$0xff] (!%p950_p8), %vm231_vm0, %v1420_v0  ;;  %235 = vst.msk [vmem:[#allocation2 + $0x18] sm:$0xff] (!%p950_p8), %vm231_vm0, %v1420_v0 }
  0x4d   : > { %s948_s26 = sshll.u32 %s1857_s23, 5  ;;  %236 = vst.msk [vmem:[#allocation2 + $0x20] sm:$0xff] (!%p950_p8), %vm231_vm0, %v1420_v0  ;;  %237 = vst.msk [vmem:[#allocation2 + $0x28] sm:$0xff] (!%p950_p8), %vm231_vm0, %v1420_v0 }
  0x4e   : > { %s223_s27 = sadd.s32 %s948_s26, %s1859_s20  ;;  %238 = vst.msk [vmem:[#allocation2 + $0x30] sm:$0xff] (!%p950_p8), %vm231_vm0, %v1420_v0  ;;  %239 = vst.msk [vmem:[#allocation2 + $0x38] sm:$0xff] (!%p950_p8), %vm231_vm0, %v1420_v0 }
  0x4f   : > { %s949_s28 = sshll.u32 %s223_s27, 3  ;;  %240 = vst.msk [vmem:[#allocation2 + $0x40] sm:$0xff] (!%p950_p8), %vm231_vm0, %v1420_v0  ;;  %241 = vst.msk [vmem:[#allocation2 + $0x48] sm:$0xff] (!%p950_p8), %vm231_vm0, %v1420_v0 }
  0x50   : > { %s1587_s4 = scalar_lea.vmem %s1831_s3, %s949_s28  ;;  %242 = vst.msk [vmem:[#allocation2 + $0x50] sm:$0xff] (!%p950_p8), %vm231_vm0, %v1420_v0  ;;  %243 = vst.msk [vmem:[#allocation2 + $0x58] sm:$0xff] (!%p950_p8), %vm231_vm0, %v1420_v0 }
  0x51   : > { %244 = vst.msk [vmem:[#allocation2 + $0x60] sm:$0xff] (!%p950_p8), %vm231_vm0, %v1420_v0  ;;  %245 = vst.msk [vmem:[#allocation2 + $0x68] sm:$0xff] (!%p950_p8), %vm231_vm0, %v1420_v0 }
  0x52   : > { %246 = vst.msk [vmem:[#allocation2 + $0x70] sm:$0xff] %vm231_vm0, %v1420_v0  ;;  %247 = vst.msk [vmem:[#allocation2 + $0x78] sm:$0xff] %vm231_vm0, %v1420_v0 }
  0x53 PF: > { %v344_v1 = vld [vmem:[%s1582_s25 + $0x80] sm:$0xff]  ;;  %v345_v2 = vld [vmem:[%s1582_s25 + $0x88] sm:$0xff]  ;;  %v346_v12 = vld [vmem:[%s1582_s25 + $0x90] sm:$0xff]  ;;  %vm698_vm1 = vcmask 523264   ;;  %p951_p9 = scmp.ne.s32.totalorder %s1390_s12, 1 }
  0x54   : > { %v376_v3 = vld [vmem:[%s1582_s25 + $0x180] sm:$0xff]  ;;  %v1115_v4 = vpack.c.bf16 %v345_v2, %v344_v1  ;;  %v377_v5 = vld [vmem:[%s1582_s25 + $0x188] sm:$0xff]  ;;  %v347_v14 = vld [vmem:[%s1582_s25 + $0x98] sm:$0xff] }
  0x55   : > { %v328_v6 = vld [vmem:[%s1582_s25] sm:$0xff]  ;;  %v329_v7 = vld [vmem:[%s1582_s25 + $0x8] sm:$0xff]  ;;  %v1147_v8 = vpack.c.bf16 %v377_v5, %v376_v3  ;;  %v378_v15 = vld [vmem:[%s1582_s25 + $0x190] sm:$0xff]  ;;  %v1119_v17 = vpack.c.bf16 %v347_v14, %v346_v12 }
  0x56   : > { %v1117_v9 = vpack.c.bf16 %v329_v7, %v328_v6  ;;  %v360_v10 = vld [vmem:[%s1582_s25 + $0x100] sm:$0xff]  ;;  %v361_v11 = vld [vmem:[%s1582_s25 + $0x108] sm:$0xff]  ;;  %1116 = vmatprep.subr.bf16.mxu0 %v1115_v4  ;;  %v379_v16 = vld [vmem:[%s1582_s25 + $0x198] sm:$0xff] }
  0x57   : > { %v1149_v13 = vpack.c.bf16 %v361_v11, %v360_v10  ;;  %1148 = vmatprep.subr.bf16.mxu1 %v1147_v8  ;;  %v1151_v18 = vpack.c.bf16 %v379_v16, %v378_v15  ;;  %v330_v19 = vld [vmem:[%s1582_s25 + $0x10] sm:$0xff]  ;;  %v331_v20 = vld [vmem:[%s1582_s25 + $0x18] sm:$0xff]  ;;  %v348_v24 = vld [vmem:[%s1582_s25 + $0xa0] sm:$0xff] }
  0x58   : > { %1118 = vmatpush3.bf16.msra.mxu0 %v1117_v9  ;;  %v362_v21 = vld [vmem:[%s1582_s25 + $0x110] sm:$0xff]  ;;  %v1121_v22 = vpack.c.bf16 %v331_v20, %v330_v19  ;;  %v363_v23 = vld [vmem:[%s1582_s25 + $0x118] sm:$0xff]  ;;  %v349_v25 = vld [vmem:[%s1582_s25 + $0xa8] sm:$0xff] }
  0x59   : > { %1150 = vmatpush3.bf16.msra.mxu1 %v1149_v13  ;;  %1120 = vmatprep.subr.bf16.mxu0 %v1119_v17  ;;  %v1153_v26 = vpack.c.bf16 %v363_v23, %v362_v21  ;;  %v1123_v27 = vpack.c.bf16 %v349_v25, %v348_v24  ;;  %v380_v28 = vld [vmem:[%s1582_s25 + $0x1a0] sm:$0xff]  ;;  %v381_v29 = vld [vmem:[%s1582_s25 + $0x1a8] sm:$0xff]  ;;  %v350_v36 = vld [vmem:[%s1582_s25 + $0xb0] sm:$0xff] }
  0x5a   : > { %1152 = vmatprep.subr.bf16.mxu1 %v1151_v18  ;;  %v332_v30 = vld [vmem:[%s1582_s25 + $0x20] sm:$0xff]  ;;  %v1155_v31 = vpack.c.bf16 %v381_v29, %v380_v28  ;;  %v333_v32 = vld [vmem:[%s1582_s25 + $0x28] sm:$0xff]  ;;  %v351_v37 = vld [vmem:[%s1582_s25 + $0xb8] sm:$0xff] }
  0x5b   : > { %v364_v33 = vld [vmem:[%s1582_s25 + $0x120] sm:$0xff]  ;;  %v365_v34 = vld [vmem:[%s1582_s25 + $0x128] sm:$0xff]  ;;  %v1125_v35 = vpack.c.bf16 %v333_v32, %v332_v30  ;;  %v382_v38 = vld [vmem:[%s1582_s25 + $0x1b0] sm:$0xff]  ;;  %v1127_v40 = vpack.c.bf16 %v351_v37, %v350_v36 }
  0x5c   : > { %1122 = vmatpush3.bf16.msra.mxu0 %v1121_v22  ;;  %v1157_v39 = vpack.c.bf16 %v365_v34, %v364_v33  ;;  %v383_v41 = vld [vmem:[%s1582_s25 + $0x1b8] sm:$0xff]  ;;  %v334_v42 = vld [vmem:[%s1582_s25 + $0x30] sm:$0xff]  ;;  %v352_v47 = vld [vmem:[%s1582_s25 + $0xc0] sm:$0xff] }
  0x5d   : > { %1154 = vmatpush3.bf16.msra.mxu1 %v1153_v26  ;;  %1124 = vmatprep.subr.bf16.mxu0 %v1123_v27  ;;  %v335_v43 = vld [vmem:[%s1582_s25 + $0x38] sm:$0xff]  ;;  %v1159_v44 = vpack.c.bf16 %v383_v41, %v382_v38  ;;  %v366_v45 = vld [vmem:[%s1582_s25 + $0x130] sm:$0xff]  ;;  %v353_v48 = vld [vmem:[%s1582_s25 + $0xc8] sm:$0xff] }
  0x5e   : > { %1156 = vmatprep.subr.bf16.mxu1 %v1155_v31  ;;  %v367_v46 = vld [vmem:[%s1582_s25 + $0x138] sm:$0xff]  ;;  %v384_v49 = vld [vmem:[%s1582_s25 + $0x1c0] sm:$0xff]  ;;  %v385_v50 = vld [vmem:[%s1582_s25 + $0x1c8] sm:$0xff]  ;;  %v1129_v51 = vpack.c.bf16 %v335_v43, %v334_v42  ;;  %v1131_v53 = vpack.c.bf16 %v353_v48, %v352_v47 }
  0x5f   : > { %v1161_v52 = vpack.c.bf16 %v367_v46, %v366_v45  ;;  %v336_v54 = vld [vmem:[%s1582_s25 + $0x40] sm:$0xff]  ;;  %v337_v55 = vld [vmem:[%s1582_s25 + $0x48] sm:$0xff]  ;;  %v1163_v57 = vpack.c.bf16 %v385_v50, %v384_v49  ;;  %v354_v59 = vld [vmem:[%s1582_s25 + $0xd0] sm:$0xff] }
  0x60   : > { %1126 = vmatpush3.bf16.msra.mxu0 %v1125_v35  ;;  %v368_v56 = vld [vmem:[%s1582_s25 + $0x140] sm:$0xff]  ;;  %v369_v58 = vld [vmem:[%s1582_s25 + $0x148] sm:$0xff]  ;;  %v355_v60 = vld [vmem:[%s1582_s25 + $0xd8] sm:$0xff]  ;;  %v1133_v63 = vpack.c.bf16 %v337_v55, %v336_v54 }
  0x61   : > { %1158 = vmatpush3.bf16.msra.mxu1 %v1157_v39  ;;  %1128 = vmatprep.subr.bf16.mxu0 %v1127_v40  ;;  %v386_v61 = vld [vmem:[%s1582_s25 + $0x1d0] sm:$0xff]  ;;  %v387_v62 = vld [vmem:[%s1582_s25 + $0x1d8] sm:$0xff]  ;;  %v1165_v0 = vpack.c.bf16 %v369_v58, %v368_v56  ;;  %v1135_v1 = vpack.c.bf16 %v355_v60, %v354_v59  ;;  %v356_v7 = vld [vmem:[%s1582_s25 + $0xe0] sm:$0xff] }
  0x62   : > { %1160 = vmatprep.subr.bf16.mxu1 %v1159_v44  ;;  %v338_v2 = vld [vmem:[%s1582_s25 + $0x50] sm:$0xff]  ;;  %v339_v3 = vld [vmem:[%s1582_s25 + $0x58] sm:$0xff]  ;;  %v1167_v5 = vpack.c.bf16 %v387_v62, %v386_v61  ;;  %v357_v8 = vld [vmem:[%s1582_s25 + $0xe8] sm:$0xff] }
  0x63   : > { %v370_v4 = vld [vmem:[%s1582_s25 + $0x150] sm:$0xff]  ;;  %v371_v6 = vld [vmem:[%s1582_s25 + $0x158] sm:$0xff]  ;;  %v388_v9 = vld [vmem:[%s1582_s25 + $0x1e0] sm:$0xff]  ;;  %v1137_v11 = vpack.c.bf16 %v339_v3, %v338_v2  ;;  %v1139_v15 = vpack.c.bf16 %v357_v8, %v356_v7 }
  0x64   : > { %1130 = vmatpush3.bf16.msra.mxu0 %v1129_v51  ;;  %v389_v10 = vld [vmem:[%s1582_s25 + $0x1e8] sm:$0xff]  ;;  %v340_v12 = vld [vmem:[%s1582_s25 + $0x60] sm:$0xff]  ;;  %v1169_v14 = vpack.c.bf16 %v371_v6, %v370_v4  ;;  %v267_v18 = vld [vmem:[%s1569_s24 + $0x18] sm:$0xff] }
  0x65   : > { %1162 = vmatpush3.bf16.msra.mxu1 %v1161_v52  ;;  %1132 = vmatprep.subr.bf16.mxu0 %v1131_v53  ;;  %v341_v13 = vld [vmem:[%s1582_s25 + $0x68] sm:$0xff]  ;;  %v372_v16 = vld [vmem:[%s1582_s25 + $0x160] sm:$0xff]  ;;  %v1171_v19 = vpack.c.bf16 %v389_v10, %v388_v9  ;;  %v358_v21 = vld [vmem:[%s1582_s25 + $0xf0] sm:$0xff] }
  0x66   : > { %1164 = vmatprep.subr.bf16.mxu1 %v1163_v57  ;;  %v265_v17 = vld [vmem:[%s1569_s24 + $0x8] sm:$0xff]  ;;  %v359_v22 = vld [vmem:[%s1582_s25 + $0xf8] sm:$0xff]  ;;  %v390_v23 = vld [vmem:[%s1582_s25 + $0x1f0] sm:$0xff]  ;;  %601 = vmatprep.mubr.f32.mxu1 %v267_v18  ;;  %v1141_v25 = vpack.c.bf16 %v341_v13, %v340_v12 }
  0x67   : > { %v373_v20 = vld [vmem:[%s1582_s25 + $0x168] sm:$0xff]  ;;  %456 = vmatprep.mubr.f32.mxu0 %v265_v17  ;;  %v391_v24 = vld [vmem:[%s1582_s25 + $0x1f8] sm:$0xff]  ;;  %v1143_v27 = vpack.c.bf16 %v359_v22, %v358_v21  ;;  %v342_v28 = vld [vmem:[%s1582_s25 + $0x70] sm:$0xff] }
  0x68   : > { %1134 = vmatpush3.bf16.msra.mxu0 %v1133_v63  ;;  %v1173_v26 = vpack.c.bf16 %v373_v20, %v372_v16  ;;  %v343_v29 = vld [vmem:[%s1582_s25 + $0x78] sm:$0xff]  ;;  %v1175_v30 = vpack.c.bf16 %v391_v24, %v390_v23  ;;  %v374_v31 = vld [vmem:[%s1582_s25 + $0x170] sm:$0xff]  ;;  %v264_v35 = vld [vmem:[%s1569_s24] sm:$0xff] }
  0x69   : > { %1166 = vmatpush3.bf16.msra.mxu1 %v1165_v0  ;;  %1136 = vmatprep.subr.bf16.mxu0 %v1135_v1  ;;  %v375_v32 = vld [vmem:[%s1582_s25 + $0x178] sm:$0xff]  ;;  %v1145_v33 = vpack.c.bf16 %v343_v29, %v342_v28  ;;  %v266_v36 = vld [vmem:[%s1569_s24 + $0x10] sm:$0xff]  ;;  %v269_v37 = vld [vmem:[%s1569_s24 + $0x28] sm:$0xff] }
  0x6a   : > { %1168 = vmatprep.subr.bf16.mxu1 %v1167_v5  ;;  %v1177_v34 = vpack.c.bf16 %v375_v32, %v374_v31  ;;  %v271_v38 = vld [vmem:[%s1569_s24 + $0x38] sm:$0xff]  ;;  %v268_v39 = vld [vmem:[%s1569_s24 + $0x20] sm:$0xff]  ;;  %v270_v40 = vld [vmem:[%s1569_s24 + $0x30] sm:$0xff] }
  0x6b   : > { %v273_v41 = vld [vmem:[%s1569_s24 + $0x48] sm:$0xff]  ;;  %v275_v42 = vld [vmem:[%s1569_s24 + $0x58] sm:$0xff]  ;;  %v272_v43 = vld [vmem:[%s1569_s24 + $0x40] sm:$0xff] }
  0x6c   : > { %1138 = vmatpush3.bf16.msra.mxu0 %v1137_v11  ;;  %v274_v44 = vld [vmem:[%s1569_s24 + $0x50] sm:$0xff]  ;;  %v277_v45 = vld [vmem:[%s1569_s24 + $0x68] sm:$0xff]  ;;  %v279_v46 = vld [vmem:[%s1569_s24 + $0x78] sm:$0xff] }
  0x6d   : > { %1170 = vmatpush3.bf16.msra.mxu1 %v1169_v14  ;;  %1140 = vmatprep.subr.bf16.mxu0 %v1139_v15  ;;  %v276_v47 = vld [vmem:[%s1569_s24 + $0x60] sm:$0xff]  ;;  %v278_v48 = vld [vmem:[%s1569_s24 + $0x70] sm:$0xff]  ;;  %v281_v49 = vld [vmem:[%s1569_s24 + $0x88] sm:$0xff] }
  0x6e   : > { %1172 = vmatprep.subr.bf16.mxu1 %v1171_v19  ;;  %v283_v50 = vld [vmem:[%s1569_s24 + $0x98] sm:$0xff]  ;;  %v280_v51 = vld [vmem:[%s1569_s24 + $0x80] sm:$0xff]  ;;  %v282_v52 = vld [vmem:[%s1569_s24 + $0x90] sm:$0xff] }
  0x6f   : > { %v285_v53 = vld [vmem:[%s1569_s24 + $0xa8] sm:$0xff]  ;;  %v287_v54 = vld [vmem:[%s1569_s24 + $0xb8] sm:$0xff]  ;;  %v284_v55 = vld [vmem:[%s1569_s24 + $0xa0] sm:$0xff] }
  0x70   : > { %1142 = vmatpush3.bf16.msra.mxu0 %v1141_v25  ;;  %v286_v56 = vld [vmem:[%s1569_s24 + $0xb0] sm:$0xff]  ;;  %v289_v57 = vld [vmem:[%s1569_s24 + $0xc8] sm:$0xff]  ;;  %v291_v58 = vld [vmem:[%s1569_s24 + $0xd8] sm:$0xff] }
  0x71   : > { %1174 = vmatpush3.bf16.msra.mxu1 %v1173_v26  ;;  %1144 = vmatprep.subr.bf16.mxu0 %v1143_v27  ;;  %v288_v59 = vld [vmem:[%s1569_s24 + $0xc0] sm:$0xff]  ;;  %v290_v60 = vld [vmem:[%s1569_s24 + $0xd0] sm:$0xff]  ;;  %v293_v61 = vld [vmem:[%s1569_s24 + $0xe8] sm:$0xff] }
  0x72   : > { %1176 = vmatprep.subr.bf16.mxu1 %v1175_v30  ;;  %v295_v62 = vld [vmem:[%s1569_s24 + $0xf8] sm:$0xff]  ;;  %v292_v63 = vld [vmem:[%s1569_s24 + $0xe0] sm:$0xff]  ;;  %v294_v0 = vld [vmem:[%s1569_s24 + $0xf0] sm:$0xff] }
  0x73   : > { %v297_v1 = vld [vmem:[%s1569_s24 + $0x108] sm:$0xff]  ;;  %v299_v2 = vld [vmem:[%s1569_s24 + $0x118] sm:$0xff]  ;;  %v296_v3 = vld [vmem:[%s1569_s24 + $0x100] sm:$0xff] }
  0x74   : > { %1146 = vmatpush3.bf16.msra.mxu0 %v1145_v33  ;;  %v298_v4 = vld [vmem:[%s1569_s24 + $0x110] sm:$0xff]  ;;  %v301_v5 = vld [vmem:[%s1569_s24 + $0x128] sm:$0xff]  ;;  %v303_v6 = vld [vmem:[%s1569_s24 + $0x138] sm:$0xff] }
  0x75   : > { %1178 = vmatpush3.bf16.msra.mxu1 %v1177_v34  ;;  %v300_v7 = vld [vmem:[%s1569_s24 + $0x120] sm:$0xff]  ;;  %v302_v8 = vld [vmem:[%s1569_s24 + $0x130] sm:$0xff]  ;;  %v305_v9 = vld [vmem:[%s1569_s24 + $0x148] sm:$0xff] }
  0x76   : > { %v307_v10 = vld [vmem:[%s1569_s24 + $0x158] sm:$0xff]  ;;  %v304_v11 = vld [vmem:[%s1569_s24 + $0x140] sm:$0xff]  ;;  %v306_v12 = vld [vmem:[%s1569_s24 + $0x150] sm:$0xff] }
  0x77   : > { %457 = vmatmul.mubr.f32.vlgmr.msra.gmra.mrb[0].mxu0 %v264_v35  ;;  %v309_v13 = vld [vmem:[%s1569_s24 + $0x168] sm:$0xff]  ;;  %v311_v14 = vld [vmem:[%s1569_s24 + $0x178] sm:$0xff]  ;;  %v308_v15 = vld [vmem:[%s1569_s24 + $0x160] sm:$0xff] }
  0x78   : > { %602 = vmatmul.mubr.f32.vlgmr.msra.gmra.mrb[0].mxu1 %v266_v36  ;;  %461 = vmatprep.mubr.f32.mxu0 %v269_v37  ;;  %v310_v16 = vld [vmem:[%s1569_s24 + $0x170] sm:$0xff]  ;;  %v313_v17 = vld [vmem:[%s1569_s24 + $0x188] sm:$0xff]  ;;  %v315_v18 = vld [vmem:[%s1569_s24 + $0x198] sm:$0xff] }
  0x79   : > { %606 = vmatprep.mubr.f32.mxu1 %v271_v38  ;;  %v312_v19 = vld [vmem:[%s1569_s24 + $0x180] sm:$0xff]  ;;  %v314_v20 = vld [vmem:[%s1569_s24 + $0x190] sm:$0xff]  ;;  %v317_v21 = vld [vmem:[%s1569_s24 + $0x1a8] sm:$0xff] }
  0x7a   : > { %v319_v22 = vld [vmem:[%s1569_s24 + $0x1b8] sm:$0xff]  ;;  %v316_v23 = vld [vmem:[%s1569_s24 + $0x1a0] sm:$0xff]  ;;  %v318_v24 = vld [vmem:[%s1569_s24 + $0x1b0] sm:$0xff] }
  0x7b   : > { %462 = vmatmul.mubr.f32.gmra.mrb[2].mxu0 %v268_v39  ;;  %v321_v25 = vld [vmem:[%s1569_s24 + $0x1c8] sm:$0xff]  ;;  %v323_v26 = vld [vmem:[%s1569_s24 + $0x1d8] sm:$0xff]  ;;  %v320_v27 = vld [vmem:[%s1569_s24 + $0x1c0] sm:$0xff] }
  0x7c   : > { %607 = vmatmul.mubr.f32.gmra.mrb[2].mxu1 %v270_v40  ;;  %466 = vmatprep.mubr.f32.mxu0 %v273_v41  ;;  %v322_v28 = vld [vmem:[%s1569_s24 + $0x1d0] sm:$0xff]  ;;  %v325_v29 = vld [vmem:[%s1569_s24 + $0x1e8] sm:$0xff]  ;;  %v327_v30 = vld [vmem:[%s1569_s24 + $0x1f8] sm:$0xff] }
  0x7d   : > { %611 = vmatprep.mubr.f32.mxu1 %v275_v42  ;;  %v324_v31 = vld [vmem:[%s1569_s24 + $0x1e0] sm:$0xff]  ;;  %v326_v32 = vld [vmem:[%s1569_s24 + $0x1f0] sm:$0xff] }
  0x7e   : > { %v248_v39 = vld [vmem:[#allocation2] sm:$0xff] }
  0x7f   : > { %467 = vmatmul.mubr.f32.gmra.mrb[4].mxu0 %v272_v43 }
  0x80   : > { %612 = vmatmul.mubr.f32.gmra.mrb[4].mxu1 %v274_v44  ;;  %471 = vmatprep.mubr.f32.mxu0 %v277_v45 }
  0x81   : > { %616 = vmatprep.mubr.f32.mxu1 %v279_v46 }
  0x83   : > { %472 = vmatmul.mubr.f32.gmra.mrb[6].mxu0 %v276_v47 }
  0x84   : > { %617 = vmatmul.mubr.f32.gmra.mrb[6].mxu1 %v278_v48  ;;  %476 = vmatprep.mubr.f32.mxu0 %v281_v49  ;;  %v249_v48 = vld [vmem:[#allocation2 + $0x8] sm:$0xff] }
  0x85   : > { %621 = vmatprep.mubr.f32.mxu1 %v283_v50 }
  0x87   : > { %477 = vmatmul.mubr.f32.gmra.mrb[8].mxu0 %v280_v51 }
  0x88   : > { %622 = vmatmul.mubr.f32.gmra.mrb[8].mxu1 %v282_v52  ;;  %481 = vmatprep.mubr.f32.mxu0 %v285_v53 }
  0x89   : > { %626 = vmatprep.mubr.f32.mxu1 %v287_v54 }
  0x8b   : > { %482 = vmatmul.mubr.f32.gmra.mrb[10].mxu0 %v284_v55 }
  0x8c   : > { %627 = vmatmul.mubr.f32.gmra.mrb[10].mxu1 %v286_v56  ;;  %486 = vmatprep.mubr.f32.mxu0 %v289_v57  ;;  %v250_v57 = vld [vmem:[#allocation2 + $0x10] sm:$0xff] }
  0x8d   : > { %631 = vmatprep.mubr.f32.mxu1 %v291_v58 }
  0x8f   : > { %487 = vmatmul.mubr.f32.gmra.mrb[12].mxu0 %v288_v59 }
  0x90   : > { %632 = vmatmul.mubr.f32.gmra.mrb[12].mxu1 %v290_v60  ;;  %491 = vmatprep.mubr.f32.mxu0 %v293_v61 }
  0x91   : > { %636 = vmatprep.mubr.f32.mxu1 %v295_v62 }
  0x93   : > { %492 = vmatmul.mubr.f32.gmra.mrb[14].mxu0 %v292_v63 }
  0x94   : > { %637 = vmatmul.mubr.f32.gmra.mrb[14].mxu1 %v294_v0  ;;  %496 = vmatprep.mubr.f32.mxu0 %v297_v1 }
  0x95   : > { %641 = vmatprep.mubr.f32.mxu1 %v299_v2  ;;  %v251_v2 = vld [vmem:[#allocation2 + $0x18] sm:$0xff] }
  0x97   : > { %497 = vmatmul.mubr.f32.gmra.mrb[16].mxu0 %v296_v3 }
  0x98   : > { %642 = vmatmul.mubr.f32.gmra.mrb[16].mxu1 %v298_v4  ;;  %501 = vmatprep.mubr.f32.mxu0 %v301_v5 }
  0x99   : > { %646 = vmatprep.mubr.f32.mxu1 %v303_v6 }
  0x9b   : > { %502 = vmatmul.mubr.f32.gmra.mrb[18].mxu0 %v300_v7 }
  0x9c   : > { %647 = vmatmul.mubr.f32.gmra.mrb[18].mxu1 %v302_v8  ;;  %506 = vmatprep.mubr.f32.mxu0 %v305_v9 }
  0x9d   : > { %651 = vmatprep.mubr.f32.mxu1 %v307_v10 }
  0x9f   : > { %507 = vmatmul.mubr.f32.gmra.mrb[20].mxu0 %v304_v11  ;;  %v252_v11 = vld [vmem:[#allocation2 + $0x20] sm:$0xff] }
  0xa0   : > { %652 = vmatmul.mubr.f32.gmra.mrb[20].mxu1 %v306_v12  ;;  %511 = vmatprep.mubr.f32.mxu0 %v309_v13 }
  0xa1   : > { %656 = vmatprep.mubr.f32.mxu1 %v311_v14 }
  0xa3   : > { %512 = vmatmul.mubr.f32.gmra.mrb[22].mxu0 %v308_v15 }
  0xa4   : > { %657 = vmatmul.mubr.f32.gmra.mrb[22].mxu1 %v310_v16  ;;  %516 = vmatprep.mubr.f32.mxu0 %v313_v17 }
  0xa5   : > { %661 = vmatprep.mubr.f32.mxu1 %v315_v18 }
  0xa7   : > { %517 = vmatmul.mubr.f32.gmra.mrb[24].mxu0 %v312_v19 }
  0xa8   : > { %662 = vmatmul.mubr.f32.gmra.mrb[24].mxu1 %v314_v20  ;;  %521 = vmatprep.mubr.f32.mxu0 %v317_v21  ;;  %v253_v20 = vld [vmem:[#allocation2 + $0x28] sm:$0xff] }
  0xa9   : > { %666 = vmatprep.mubr.f32.mxu1 %v319_v22 }
  0xab   : > { %522 = vmatmul.mubr.f32.gmra.mrb[26].mxu0 %v316_v23 }
  0xac   : > { %667 = vmatmul.mubr.f32.gmra.mrb[26].mxu1 %v318_v24  ;;  %526 = vmatprep.mubr.f32.mxu0 %v321_v25 }
  0xad   : > { %671 = vmatprep.mubr.f32.mxu1 %v323_v26 }
  0xaf   : > { %527 = vmatmul.mubr.f32.gmra.mrb[28].mxu0 %v320_v27 }
  0xb0   : > { %672 = vmatmul.mubr.f32.gmra.mrb[28].mxu1 %v322_v28  ;;  %531 = vmatprep.mubr.f32.mxu0 %v325_v29  ;;  %v254_v29 = vld [vmem:[#allocation2 + $0x30] sm:$0xff] }
  0xb1   : > { %676 = vmatprep.mubr.f32.mxu1 %v327_v30 }
  0xb3   : > { %532 = vmatmul.mubr.f32.gmra.mrb[30].mxu0 %v324_v31 }
  0xb4   : > { %677 = vmatmul.mubr.f32.gmra.mrb[30].mxu1 %v326_v32 }
 0x14a   : > { %v987_v33 = vpop.f32.mrb[0].mxu0 }
 0x14b   : > { %v1067_v34 = vpop.f32.mrb[0].mxu1  ;;  %v988_v35 = vpop.f32.mrb[1].mxu0 }
 0x14c   : > { %v989_v36 = vadd.f32 %v988_v35, %v987_v33  ;;  %v1068_v37 = vpop.f32.mrb[1].mxu1 }
 0x14d   : > { %v1069_v38 = vadd.f32 %v1068_v37, %v1067_v34 }
 0x14e   : > { %v990_v40 = vpop.f32.mrb[2].mxu0 }
 0x14f   : > { %v604_v41 = vadd.f32 %v1069_v38, %v989_v36  ;;  %v1070_v42 = vpop.f32.mrb[2].mxu1  ;;  %v991_v43 = vpop.f32.mrb[3].mxu0  ;;  %v255_v38 = vld [vmem:[#allocation2 + $0x38] sm:$0xff] }
 0x150   : > { %v992_v44 = vadd.f32 %v991_v43, %v990_v40  ;;  %v1071_v45 = vpop.f32.mrb[3].mxu1 }
 0x151   : > { %v682_v46 = vadd.f32 %v604_v41, %v248_v39  ;;  %v1072_v47 = vadd.f32 %v1071_v45, %v1070_v42 }
 0x152   : > { %v993_v49 = vpop.f32.mrb[4].mxu0 }
 0x153   : > { %699 = vst.msk [vmem:[#allocation2] sm:$0xff] %vm698_vm1, %v682_v46  ;;  %v609_v50 = vadd.f32 %v1072_v47, %v992_v44  ;;  %v1073_v51 = vpop.f32.mrb[4].mxu1  ;;  %v994_v52 = vpop.f32.mrb[5].mxu0  ;;  %v256_v47 = vld [vmem:[#allocation2 + $0x40] sm:$0xff] }
 0x154   : > { %v995_v53 = vadd.f32 %v994_v52, %v993_v49  ;;  %v1074_v54 = vpop.f32.mrb[5].mxu1 }
 0x155   : > { %v683_v55 = vadd.f32 %v609_v50, %v249_v48  ;;  %v1075_v56 = vadd.f32 %v1074_v54, %v1073_v51 }
 0x156   : > { %v996_v58 = vpop.f32.mrb[6].mxu0 }
 0x157   : > { %700 = vst.msk [vmem:[#allocation2 + $0x8] sm:$0xff] %vm698_vm1, %v683_v55  ;;  %v614_v59 = vadd.f32 %v1075_v56, %v995_v53  ;;  %v1076_v60 = vpop.f32.mrb[6].mxu1  ;;  %v997_v61 = vpop.f32.mrb[7].mxu0  ;;  %v257_v56 = vld [vmem:[#allocation2 + $0x48] sm:$0xff] }
 0x158   : > { %v998_v62 = vadd.f32 %v997_v61, %v996_v58  ;;  %v1077_v63 = vpop.f32.mrb[7].mxu1 }
 0x159   : > { %v684_v0 = vadd.f32 %v614_v59, %v250_v57  ;;  %v1078_v1 = vadd.f32 %v1077_v63, %v1076_v60 }
 0x15a   : > { %v999_v3 = vpop.f32.mrb[8].mxu0 }
 0x15b   : > { %701 = vst.msk [vmem:[#allocation2 + $0x10] sm:$0xff] %vm698_vm1, %v684_v0  ;;  %v619_v4 = vadd.f32 %v1078_v1, %v998_v62  ;;  %v1079_v5 = vpop.f32.mrb[8].mxu1  ;;  %v1000_v6 = vpop.f32.mrb[9].mxu0  ;;  %v258_v1 = vld [vmem:[#allocation2 + $0x50] sm:$0xff] }
 0x15c   : > { %v1001_v7 = vadd.f32 %v1000_v6, %v999_v3  ;;  %v1080_v8 = vpop.f32.mrb[9].mxu1 }
 0x15d   : > { %v685_v9 = vadd.f32 %v619_v4, %v251_v2  ;;  %v1081_v10 = vadd.f32 %v1080_v8, %v1079_v5 }
 0x15e   : > { %v1002_v12 = vpop.f32.mrb[10].mxu0 }
 0x15f   : > { %702 = vst.msk [vmem:[#allocation2 + $0x18] sm:$0xff] %vm698_vm1, %v685_v9  ;;  %v624_v13 = vadd.f32 %v1081_v10, %v1001_v7  ;;  %v1082_v14 = vpop.f32.mrb[10].mxu1  ;;  %v1003_v15 = vpop.f32.mrb[11].mxu0  ;;  %v259_v10 = vld [vmem:[#allocation2 + $0x58] sm:$0xff] }
 0x160   : > { %v1004_v16 = vadd.f32 %v1003_v15, %v1002_v12  ;;  %v1083_v17 = vpop.f32.mrb[11].mxu1 }
 0x161   : > { %v686_v18 = vadd.f32 %v624_v13, %v252_v11  ;;  %v1084_v19 = vadd.f32 %v1083_v17, %v1082_v14 }
 0x162   : > { %v1005_v21 = vpop.f32.mrb[12].mxu0 }
 0x163   : > { %703 = vst.msk [vmem:[#allocation2 + $0x20] sm:$0xff] %vm698_vm1, %v686_v18  ;;  %v629_v22 = vadd.f32 %v1084_v19, %v1004_v16  ;;  %v1085_v23 = vpop.f32.mrb[12].mxu1  ;;  %v1006_v24 = vpop.f32.mrb[13].mxu0  ;;  %v260_v19 = vld [vmem:[#allocation2 + $0x60] sm:$0xff] }
 0x164   : > { %v1007_v25 = vadd.f32 %v1006_v24, %v1005_v21  ;;  %v1086_v26 = vpop.f32.mrb[13].mxu1 }
 0x165   : > { %v687_v27 = vadd.f32 %v629_v22, %v253_v20  ;;  %v1087_v28 = vadd.f32 %v1086_v26, %v1085_v23 }
 0x166   : > { %v1008_v30 = vpop.f32.mrb[14].mxu0 }
 0x167   : > { %704 = vst.msk [vmem:[#allocation2 + $0x28] sm:$0xff] %vm698_vm1, %v687_v27  ;;  %v634_v31 = vadd.f32 %v1087_v28, %v1007_v25  ;;  %v1088_v32 = vpop.f32.mrb[14].mxu1  ;;  %v1009_v33 = vpop.f32.mrb[15].mxu0  ;;  %v261_v28 = vld [vmem:[#allocation2 + $0x68] sm:$0xff] }
 0x168   : > { %v1010_v34 = vadd.f32 %v1009_v33, %v1008_v30  ;;  %v1089_v35 = vpop.f32.mrb[15].mxu1 }
 0x169   : > { %v688_v36 = vadd.f32 %v634_v31, %v254_v29  ;;  %v1090_v37 = vadd.f32 %v1089_v35, %v1088_v32 }
 0x16a   : > { %v1011_v39 = vpop.f32.mrb[16].mxu0 }
 0x16b   : > { %705 = vst.msk [vmem:[#allocation2 + $0x30] sm:$0xff] %vm698_vm1, %v688_v36  ;;  %v639_v40 = vadd.f32 %v1090_v37, %v1010_v34  ;;  %v1091_v41 = vpop.f32.mrb[16].mxu1  ;;  %v1012_v42 = vpop.f32.mrb[17].mxu0  ;;  %v262_v37 = vld [vmem:[#allocation2 + $0x70] sm:$0xff] }
 0x16c   : > { %v1013_v43 = vadd.f32 %v1012_v42, %v1011_v39  ;;  %v1092_v44 = vpop.f32.mrb[17].mxu1 }
 0x16d   : > { %v689_v45 = vadd.f32 %v639_v40, %v255_v38  ;;  %v1093_v46 = vadd.f32 %v1092_v44, %v1091_v41 }
 0x16e   : > { %v1014_v48 = vpop.f32.mrb[18].mxu0 }
 0x16f   : > { %706 = vst.msk [vmem:[#allocation2 + $0x38] sm:$0xff] %vm698_vm1, %v689_v45  ;;  %v644_v49 = vadd.f32 %v1093_v46, %v1013_v43  ;;  %v1094_v50 = vpop.f32.mrb[18].mxu1  ;;  %v1015_v51 = vpop.f32.mrb[19].mxu0  ;;  %v263_v46 = vld [vmem:[#allocation2 + $0x78] sm:$0xff] }
 0x170   : > { %v1016_v52 = vadd.f32 %v1015_v51, %v1014_v48  ;;  %v1095_v53 = vpop.f32.mrb[19].mxu1  ;;  %v721_v51 = vld [vmem:[#allocation2 + $0x10] sm:$0xff] (!%p951_p9) }
 0x171   : > { %v690_v54 = vadd.f32 %v644_v49, %v256_v47  ;;  %v1096_v55 = vadd.f32 %v1095_v53, %v1094_v50  ;;  %v719_v49 = vld [vmem:[#allocation2] sm:$0xff] (!%p951_p9)  ;;  %v720_v50 = vld [vmem:[#allocation2 + $0x8] sm:$0xff] (!%p951_p9) }
 0x172   : > { %v1017_v57 = vpop.f32.mrb[20].mxu0  ;;  %v736_v53 = vmax.f32 (!%p951_p9), %v720_v50, 1e-10 }
 0x173   : > { %707 = vst.msk [vmem:[#allocation2 + $0x40] sm:$0xff] %vm698_vm1, %v690_v54  ;;  %v649_v58 = vadd.f32 %v1096_v55, %v1016_v52  ;;  %v1097_v59 = vpop.f32.mrb[20].mxu1  ;;  %v1018_v60 = vpop.f32.mrb[21].mxu0  ;;  %v735_v52 = vmax.f32 (!%p951_p9), %v719_v49, 1e-10  ;;  %v722_v55 = vld [vmem:[#allocation2 + $0x18] sm:$0xff] (!%p951_p9) }
 0x174   : > { %v1019_v61 = vadd.f32 %v1018_v60, %v1017_v57  ;;  %v1098_v62 = vpop.f32.mrb[21].mxu1  ;;  %v737_v54 = vmax.f32 (!%p951_p9), %v721_v51, 1e-10  ;;  %v724_v57 = vld [vmem:[#allocation2 + $0x28] sm:$0xff] (!%p951_p9) }
 0x175   : > { %v691_v63 = vadd.f32 %v649_v58, %v257_v56  ;;  %v1099_v0 = vadd.f32 %v1098_v62, %v1097_v59  ;;  %v723_v56 = vld [vmem:[#allocation2 + $0x20] sm:$0xff] (!%p951_p9)  ;;  %1270 = vlog2.f32 (!%p951_p9), %v735_v52  ;;  %v738_v58 = vmax.f32 (!%p951_p9), %v722_v55, 1e-10 }
 0x176   : > { %v1020_v2 = vpop.f32.mrb[22].mxu0  ;;  %v739_v59 = vmax.f32 (!%p951_p9), %v723_v56, 1e-10  ;;  %1272 = vlog2.f32 (!%p951_p9), %v736_v53  ;;  %v740_v60 = vmax.f32 (!%p951_p9), %v724_v57, 1e-10  ;;  %v726_v62 = vld [vmem:[#allocation2 + $0x38] sm:$0xff] (!%p951_p9) }
 0x177   : > { %708 = vst.msk [vmem:[#allocation2 + $0x48] sm:$0xff] %vm698_vm1, %v691_v63  ;;  %v654_v3 = vadd.f32 %v1099_v0, %v1019_v61  ;;  %v1100_v4 = vpop.f32.mrb[22].mxu1  ;;  %v1021_v5 = vpop.f32.mrb[23].mxu0  ;;  %v725_v61 = vld [vmem:[#allocation2 + $0x30] sm:$0xff] (!%p951_p9)  ;;  %1274 = vlog2.f32 (!%p951_p9), %v737_v54 }
 0x178   : > { %v1022_v6 = vadd.f32 %v1021_v5, %v1020_v2  ;;  %v1101_v7 = vpop.f32.mrb[23].mxu1  ;;  %v741_v0 = vmax.f32 (!%p951_p9), %v725_v61, 1e-10  ;;  %1276 = vlog2.f32 (!%p951_p9), %v738_v58 }
 0x179   : > { %v692_v8 = vadd.f32 %v654_v3, %v258_v1  ;;  %v1102_v9 = vadd.f32 %v1101_v7, %v1100_v4  ;;  %v742_v1 = vmax.f32 (!%p951_p9), %v726_v62, 1e-10  ;;  %1278 = vlog2.f32 (!%p951_p9), %v739_v59 }
 0x17a   : > { %v1023_v11 = vpop.f32.mrb[24].mxu0  ;;  %v727_v63 = vld [vmem:[#allocation2 + $0x40] sm:$0xff] (!%p951_p9)  ;;  %1280 = vlog2.f32 (!%p951_p9), %v740_v60 }
 0x17b   : > { %709 = vst.msk [vmem:[#allocation2 + $0x50] sm:$0xff] %vm698_vm1, %v692_v8  ;;  %v659_v12 = vadd.f32 %v1102_v9, %v1022_v6  ;;  %v1103_v13 = vpop.f32.mrb[24].mxu1  ;;  %v1024_v14 = vpop.f32.mrb[25].mxu0  ;;  %v743_v4 = vmax.f32 (!%p951_p9), %v727_v63, 1e-10  ;;  %1282 = vlog2.f32 (!%p951_p9), %v741_v0 }
 0x17c   : > { %v1025_v15 = vadd.f32 %v1024_v14, %v1023_v11  ;;  %v1104_v16 = vpop.f32.mrb[25].mxu1  ;;  %1284 = vlog2.f32 (!%p951_p9), %v742_v1 }
 0x17d   : > { %v693_v17 = vadd.f32 %v659_v12, %v259_v10  ;;  %v1105_v18 = vadd.f32 %v1104_v16, %v1103_v13  ;;  %1286 = vlog2.f32 (!%p951_p9), %v743_v4 }
 0x17e   : > { %v1026_v20 = vpop.f32.mrb[26].mxu0  ;;  %v728_v2 = vld [vmem:[#allocation2 + $0x48] sm:$0xff] (!%p951_p9) }
 0x17f   : > { %710 = vst.msk [vmem:[#allocation2 + $0x58] sm:$0xff] %vm698_vm1, %v693_v17  ;;  %v664_v21 = vadd.f32 %v1105_v18, %v1025_v15  ;;  %v1106_v22 = vpop.f32.mrb[26].mxu1  ;;  %v1027_v23 = vpop.f32.mrb[27].mxu0  ;;  %v744_v6 = vmax.f32 (!%p951_p9), %v728_v2, 1e-10 }
 0x180   : > { %v1028_v24 = vadd.f32 %v1027_v23, %v1026_v20  ;;  %v1107_v25 = vpop.f32.mrb[27].mxu1  ;;  %v1271_v15 = vpop.eup (!%p951_p9), %1270 }
 0x181   : > { %v694_v26 = vadd.f32 %v664_v21, %v260_v19  ;;  %v1108_v27 = vadd.f32 %v1107_v25, %v1106_v22  ;;  %1288 = vlog2.f32 (!%p951_p9), %v744_v6  ;;  %v1273_v17 = vpop.eup (!%p951_p9), %1272  ;;  %v752_v18 = vmul.f32 (!%p951_p9), 0.6931472, %v1271_v15 }
 0x182   : > { %v1029_v29 = vpop.f32.mrb[28].mxu0  ;;  %v729_v3 = vld [vmem:[#allocation2 + $0x50] sm:$0xff] (!%p951_p9)  ;;  %v1275_v20 = vpop.eup (!%p951_p9), %1274  ;;  %v754_v21 = vmul.f32 (!%p951_p9), 0.6931472, %v1273_v17 }
 0x183   : > { %711 = vst.msk [vmem:[#allocation2 + $0x60] sm:$0xff] %vm698_vm1, %v694_v26  ;;  %v669_v30 = vadd.f32 %v1108_v27, %v1028_v24  ;;  %v1109_v31 = vpop.f32.mrb[28].mxu1  ;;  %v1030_v32 = vpop.f32.mrb[29].mxu0  ;;  %v745_v8 = vmax.f32 (!%p951_p9), %v729_v3, 1e-10 }
 0x184   : > { %v1031_v33 = vadd.f32 %v1030_v32, %v1029_v29  ;;  %v1110_v34 = vpop.f32.mrb[29].mxu1  ;;  %v1277_v22 = vpop.eup (!%p951_p9), %1276  ;;  %v783_v23 = vmul.f32 (!%p951_p9), 4.3429446, %v752_v18  ;;  %v756_v24 = vmul.f32 (!%p951_p9), 0.6931472, %v1275_v20 }
 0x185   : > { %v695_v35 = vadd.f32 %v669_v30, %v261_v28  ;;  %v1111_v36 = vadd.f32 %v1110_v34, %v1109_v31  ;;  %1290 = vlog2.f32 (!%p951_p9), %v745_v8  ;;  %v1279_v25 = vpop.eup (!%p951_p9), %1278  ;;  %v784_v26 = vmul.f32 (!%p951_p9), 4.3429446, %v754_v21 }
 0x186   : > { %v1032_v38 = vpop.f32.mrb[30].mxu0  ;;  %v730_v5 = vld [vmem:[#allocation2 + $0x58] sm:$0xff] (!%p951_p9)  ;;  %v758_v27 = vmul.f32 (!%p951_p9), 0.6931472, %v1277_v22  ;;  %v1281_v28 = vpop.eup (!%p951_p9), %1280  ;;  %799 = vst.msk [vmem:[%s1587_s4] sm:$0xff] (!%p951_p9), %vm698_vm1, %v783_v23 }
 0x187   : > { %712 = vst.msk [vmem:[#allocation2 + $0x68] sm:$0xff] %vm698_vm1, %v695_v35  ;;  %v674_v39 = vadd.f32 %v1111_v36, %v1031_v33  ;;  %v1112_v40 = vpop.f32.mrb[30].mxu1  ;;  %v1033_v41 = vpop.f32.mrb[31].mxu0  ;;  %v746_v10 = vmax.f32 (!%p951_p9), %v730_v5, 1e-10  ;;  %800 = vst.msk [vmem:[%s1587_s4 + $0x8] sm:$0xff] (!%p951_p9), %vm698_vm1, %v784_v26 }
 0x188   : > { %v1034_v42 = vadd.f32 %v1033_v41, %v1032_v38  ;;  %v1113_v43 = vpop.f32.mrb[31].mxu1  ;;  %v785_v29 = vmul.f32 (!%p951_p9), 4.3429446, %v756_v24  ;;  %v760_v30 = vmul.f32 (!%p951_p9), 0.6931472, %v1279_v25  ;;  %v1283_v31 = vpop.eup (!%p951_p9), %1282 }
 0x189   : > { %v696_v44 = vadd.f32 %v674_v39, %v262_v37  ;;  %v1114_v45 = vadd.f32 %v1113_v43, %v1112_v40  ;;  %718 = sbr.rel (%p951_p9) target bundleno = 425 (0x1a9), region = 40  ;;  %1292 = vlog2.f32 (!%p951_p9), %v746_v10  ;;  %v786_v32 = vmul.f32 (!%p951_p9), 4.3429446, %v758_v27  ;;  %v1285_v34 = vpop.eup (!%p951_p9), %1284 }
 0x18a   : > { %v731_v7 = vld [vmem:[#allocation2 + $0x60] sm:$0xff] (!%p951_p9)  ;;  %v762_v33 = vmul.f32 (!%p951_p9), 0.6931472, %v1281_v28  ;;  %801 = vst.msk [vmem:[%s1587_s4 + $0x10] sm:$0xff] (!%p951_p9), %vm698_vm1, %v785_v29  ;;  %v787_v35 = vmul.f32 (!%p951_p9), 4.3429446, %v760_v30  ;;  %v1287_v37 = vpop.eup (!%p951_p9), %1286 }
 0x18b   : > { %713 = vst.msk [vmem:[#allocation2 + $0x70] sm:$0xff] %vm698_vm1, %v696_v44  ;;  %v679_v47 = vadd.f32 %v1114_v45, %v1034_v42  ;;  %v747_v12 = vmax.f32 (!%p951_p9), %v731_v7, 1e-10  ;;  %v764_v36 = vmul.f32 (!%p951_p9), 0.6931472, %v1283_v31  ;;  %802 = vst.msk [vmem:[%s1587_s4 + $0x18] sm:$0xff] (!%p951_p9), %vm698_vm1, %v786_v32  ;;  %v1289_v40 = vpop.eup (!%p951_p9), %1288 }
 0x18c   : > { %v788_v38 = vmul.f32 (!%p951_p9), 4.3429446, %v762_v33  ;;  %v766_v39 = vmul.f32 (!%p951_p9), 0.6931472, %v1285_v34  ;;  %803 = vst.msk [vmem:[%s1587_s4 + $0x20] sm:$0xff] (!%p951_p9), %vm698_vm1, %v787_v35 }
 0x18d   : > { %v697_v48 = vadd.f32 %v679_v47, %v263_v46  ;;  %1294 = vlog2.f32 (!%p951_p9), %v747_v12  ;;  %v789_v41 = vmul.f32 (!%p951_p9), 4.3429446, %v764_v36  ;;  %v768_v42 = vmul.f32 (!%p951_p9), 0.6931472, %v1287_v37 }
 0x18e   : > { %v732_v9 = vld [vmem:[#allocation2 + $0x68] sm:$0xff] (!%p951_p9)  ;;  %804 = vst.msk [vmem:[%s1587_s4 + $0x28] sm:$0xff] (!%p951_p9), %vm698_vm1, %v788_v38  ;;  %v790_v44 = vmul.f32 (!%p951_p9), 4.3429446, %v766_v39  ;;  %v770_v45 = vmul.f32 (!%p951_p9), 0.6931472, %v1289_v40 }
 0x18f   : > { %714 = vst.msk [vmem:[#allocation2 + $0x78] sm:$0xff] %vm698_vm1, %v697_v48  ;;  %v748_v14 = vmax.f32 (!%p951_p9), %v732_v9, 1e-10  ;;  %v1291_v43 = vpop.eup (!%p951_p9), %1290  ;;  %805 = vst.msk [vmem:[%s1587_s4 + $0x30] sm:$0xff] (!%p951_p9), %vm698_vm1, %v789_v41  ;;  %v791_v47 = vmul.f32 (!%p951_p9), 4.3429446, %v768_v42 }
 0x190   : > { %v772_v48 = vmul.f32 0.6931472, %v1291_v43  ;;  %806 = vst.msk [vmem:[%s1587_s4 + $0x38] sm:$0xff] %vm698_vm1, %v790_v44  ;;  %v792_v50 = vmul.f32 4.3429446, %v770_v45 }
 0x191   : > { %1296 = vlog2.f32 %v748_v14  ;;  %807 = vst.msk [vmem:[%s1587_s4 + $0x40] sm:$0xff] %vm698_vm1, %v791_v47 }
 0x192   : > { %v733_v11 = vld [vmem:[#allocation2 + $0x70] sm:$0xff]  ;;  %v793_v53 = vmul.f32 4.3429446, %v772_v48  ;;  %808 = vst.msk [vmem:[%s1587_s4 + $0x48] sm:$0xff] %vm698_vm1, %v792_v50 }
 0x193   : > { %v749_v16 = vmax.f32 %v733_v11, 1e-10  ;;  %v1293_v46 = vpop.eup %1292 }
 0x194   : > { %v774_v51 = vmul.f32 0.6931472, %v1293_v46  ;;  %809 = vst.msk [vmem:[%s1587_s4 + $0x50] sm:$0xff] %vm698_vm1, %v793_v53 }
 0x195   : > { %1298 = vlog2.f32 %v749_v16 }
 0x196   : > { %v734_v13 = vld [vmem:[#allocation2 + $0x78] sm:$0xff]  ;;  %v794_v56 = vmul.f32 4.3429446, %v774_v51 }
 0x197   : > { %v750_v19 = vmax.f32 %v734_v13, 1e-10  ;;  %v1295_v49 = vpop.eup %1294 }
 0x198   : > { %v776_v54 = vmul.f32 0.6931472, %v1295_v49  ;;  %810 = vst.msk [vmem:[%s1587_s4 + $0x58] sm:$0xff] %vm698_vm1, %v794_v56 }
 0x199   : > { %1300 = vlog2.f32 %v750_v19 }
 0x19a   : > { %v795_v59 = vmul.f32 4.3429446, %v776_v54 }
 0x19b   : > { %v1297_v52 = vpop.eup %1296 }
 0x19c   : > { %v778_v57 = vmul.f32 0.6931472, %v1297_v52  ;;  %811 = vst.msk [vmem:[%s1587_s4 + $0x60] sm:$0xff] %vm698_vm1, %v795_v59 }
 0x19e   : > { %v796_v61 = vmul.f32 4.3429446, %v778_v57 }
 0x19f   : > { %v1299_v55 = vpop.eup %1298 }
 0x1a0   : > { %v780_v60 = vmul.f32 0.6931472, %v1299_v55  ;;  %812 = vst.msk [vmem:[%s1587_s4 + $0x68] sm:$0xff] %vm698_vm1, %v796_v61 }
 0x1a2   : > { %v797_v63 = vmul.f32 4.3429446, %v780_v60 }
 0x1a3   : > { %v1301_v58 = vpop.eup %1300 }
 0x1a4   : > { %v782_v62 = vmul.f32 0.6931472, %v1301_v58  ;;  %813 = vst.msk [vmem:[%s1587_s4 + $0x70] sm:$0xff] %vm698_vm1, %v797_v63 }
 0x1a6   : > { %v798_v0 = vmul.f32 4.3429446, %v782_v62 }
 0x1a8   : > { %814 = vst.msk [vmem:[%s1587_s4 + $0x78] sm:$0xff] %vm698_vm1, %v798_v0 }
 0x1a9 PF: > { %s15_s18 = sadd.s32 1, %s1414_s18   ;;  %s1832_s12 = smov %s1521_s9 }
 0x1aa   : > { %p12_p10 = scmp.ge.s32.totalorder %s15_s18, 10   ;;  %s1833_s13 = sld [smem:[#allocation7_spill]] }
 0x1ab   : > { %s1834_s15 = sld [smem:[#allocation8_spill]]  ;;  %s1835_s5 = sld [smem:[#allocation9_spill]] }
 0x1ac   : > { %s1836_s9 = smov %s1382_s10  ;;  %s1837_s10 = smov %s1386_s11 }
 0x1ad   : > { %s1838_s11 = smov %s1832_s12  ;;  %s1841_s14 = smov %s1410_s17 }
 0x1ae   : > { %s1843_s17 = smov %s1853_s22  ;;  %14 = sbr.rel (!%p12_p10) target bundleno = 9 (0x9), region = 79 }
 0x1b0   : > { %s1839_s12 = smov %s1833_s13  ;;  %s1840_s13 = smov %s1406_s16 }
 0x1b1   : > { %s1842_s16 = smov %s1835_s5 }
 0x1b5   :  { %845 = vsyncpa [#allocation4], 1 }
 0x1b6   :  { %847 = vsyncpa [#allocation4 + $0x1], 1 }

</bundles_post_ra>
